<compile_context>
chip_gen: v6e
topology: v6e:2x2x1
jax: 0.10.0
libtpu: 0.0.40
codegen_flags: <defaults>
</compile_context>

<pallas_src>
import jax
import jax.numpy as jnp
import numpy as np
from jax.experimental import pallas as pl
from jax.experimental.pallas import tpu as pltpu

# ---------------- problem sizes (small, consistent with the module) ----------
H = 64          # hidden_channels
OE = 128        # out_emb_channels
OC = 16         # out_channels
L = 2           # num_output_layers
E = 96          # number of edges per graph (rows of e2 / i)
N = 32          # num_nodes per graph
B = 8           # graphs per pallas_call (batch)
G = 4           # graphs per grid step -> M = G*N = 128 MXU rows
LANE = 128      # lane-dense padded output width (sliced to OC outside)

F32 = jnp.float32
BF16 = jnp.bfloat16


# ------------------------------ fused kernel ----------------------------------
def update_v_kernel(i_ref, e2_ref, wup_ref, bup_ref, wl_ref, bl_ref,
                    wout_ref, out_ref):
    # scatter_add(e2, i, dim_size=N) per graph == one-hot matmul on the MXU:
    #   S[n, e] = (i[e] == n) ; v_g = S_g @ e2_g  -> (N, H), rows stacked to
    #   (G*N, H) so the following linear stack sees a full-height MXU tile.
    node_ids = jax.lax.broadcasted_iota(jnp.int32, (N, E), 0)           # (N, E)
    vs = []
    for g in range(G):
        scat = (node_ids == i_ref[g]).astype(BF16)                      # (N, E)
        vs.append(jnp.dot(scat, e2_ref[g], preferred_element_type=F32))  # (N, H)
    v = jnp.concatenate(vs, axis=0)                                      # (G*N, H) f32

    # lin_up (bias, no activation)
    v = jnp.dot(v.astype(BF16), wup_ref[...],
                preferred_element_type=F32) + bup_ref[...]               # (G*N, OE)

    # output layers: v = swish(lin(v)); elementwise math kept in f32
    for l in range(L):
        h = jnp.dot(v.astype(BF16), wl_ref[l],
                    preferred_element_type=F32) + bl_ref[l]
        v = h * pl.reciprocal(1.0 + jnp.exp(-h), approx=True)            # swish

    # final projection (no bias, no activation), lane-dense 128-wide output
    out = jnp.dot(v.astype(BF16), wout_ref[...],
                  preferred_element_type=F32)                            # (G*N, LANE)
    for g in range(G):
        out_ref[g] = out[g * N:(g + 1) * N]


# --------------------------------- wrapper ------------------------------------
def update_v_pallas(e2_b, i_b, p):
    assert e2_b.shape == (B, E, H) and i_b.shape == (B, E)
    assert B % G == 0
    i3 = i_b.astype(jnp.int32).reshape(B, 1, E)      # tiny index rows -> VMEM

    out = pl.pallas_call(
        update_v_kernel,
        out_shape=jax.ShapeDtypeStruct((B, N, LANE), F32),
        grid=(B // G,),
        in_specs=[
            pl.BlockSpec((G, 1, E), lambda s: (s, 0, 0)),      # edge->node indices
            pl.BlockSpec((G, E, H), lambda s: (s, 0, 0)),      # e2 (bf16)
            # weights: constant index_maps -> DMA'd once, VMEM-resident
            pl.BlockSpec((H, OE), lambda s: (0, 0)),
            pl.BlockSpec((1, OE), lambda s: (0, 0)),
            pl.BlockSpec((L, OE, OE), lambda s: (0, 0, 0)),
            pl.BlockSpec((L, 1, OE), lambda s: (0, 0, 0)),
            pl.BlockSpec((OE, LANE), lambda s: (0, 0)),
        ],
        out_specs=pl.BlockSpec((G, N, LANE), lambda s: (s, 0, 0)),
        compiler_params=pltpu.CompilerParams(
            dimension_semantics=("parallel",)),
    )(i3, e2_b, p["wup"], p["bup"], p["wl"], p["bl"], p["wout_pad"])

    return out[..., :OC]                              # drop zero-padded lanes


# ----------------------------- pure-JAX reference ------------------------------
def update_v_ref(e2_g, i_g, p):
    v = jax.ops.segment_sum(e2_g.astype(F32), i_g, num_segments=N)
    v = v @ p["wup"].astype(F32) + p["bup"]
    for l in range(L):
        h = v @ p["wl"][l].astype(F32) + p["bl"][l]
        v = h * jax.nn.sigmoid(h)
    return v @ p["wout_pad"].astype(F32)[:, :OC]


# ------------------------------ deterministic init ------------------------------
def init_params(key):
    # glorot_orthogonal replaced by scaled-normal (synthetic weights, not a
    # checkpoint); weights stored pre-transposed [in, out] in bf16, biases f32.
    def w(k, shape):
        fan_in = shape[-2]
        return (jax.random.normal(k, shape, dtype=F32) / np.sqrt(fan_in)).astype(BF16)

    k0, k1, k2, k3 = jax.random.split(key, 4)
    wout = jax.random.normal(k3, (OE, OC), dtype=F32) / np.sqrt(OE)
    wout_pad = jnp.zeros((OE, LANE), F32).at[:, :OC].set(wout).astype(BF16)
    return {
        "wup":      w(k0, (H, OE)),
        "bup":      0.1 * jax.random.normal(k1, (1, OE), dtype=F32),
        "wl":       w(k2, (L, OE, OE)),
        "bl":       jnp.zeros((L, 1, OE), F32),      # lins biases reset to 0
        "wout_pad": wout_pad,                        # lane-dense, zero-padded
    }


if __name__ == "__main__":
    key = jax.random.PRNGKey(0)
    ke, ki, kp = jax.random.split(key, 3)

    e2 = jax.random.normal(ke, (B, E, H), dtype=F32).astype(BF16)   # e = (_, e2)
    i = jax.random.randint(ki, (B, E), 0, N, dtype=jnp.int32)       # edge -> node
    params = init_params(kp)

    v = update_v_pallas(e2, i, params)
    jax.block_until_ready(v)

    v_ref = jax.vmap(lambda e_g, i_g: update_v_ref(e_g, i_g, params))(e2, i)
    np.testing.assert_allclose(np.asarray(v), np.asarray(v_ref),
                               rtol=3e-2, atol=3e-2)
    print("KERNEL_OK")
</pallas_src>

<mosaic_0001>
module attributes {stable_mosaic.version = 11 : i64} {
  func.func @update_v_kernel(%arg0: i32, %arg1: memref<4x1x96xi32, #tpu.memory_space<vmem>>, %arg2: memref<4x96x64xbf16, #tpu.memory_space<vmem>>, %arg3: memref<64x128xbf16, #tpu.memory_space<vmem>>, %arg4: memref<1x128xf32, #tpu.memory_space<vmem>>, %arg5: memref<2x128x128xbf16, #tpu.memory_space<vmem>>, %arg6: memref<2x1x128xf32, #tpu.memory_space<vmem>>, %arg7: memref<128x128xbf16, #tpu.memory_space<vmem>>, %arg8: memref<4x32x128xf32, #tpu.memory_space<vmem>>) attributes {dimension_semantics = [#tpu.dimension_semantics<parallel>], iteration_bounds = array<i64: 2>, scalar_prefetch = 0 : i64, scratch_operands = 0 : i64, tpu.core_type = #tpu.core_type<tc>, window_params = [{transform_indices = @transform_0, window_bounds = array<i64: 4, 1, 96>}, {transform_indices = @transform_1, window_bounds = array<i64: 4, 96, 64>}, {pipeline_mode = #tpu.pipeline_mode<synchronous>, transform_indices = @transform_2, window_bounds = array<i64: 64, 128>}, {pipeline_mode = #tpu.pipeline_mode<synchronous>, transform_indices = @transform_3, window_bounds = array<i64: 1, 128>}, {pipeline_mode = #tpu.pipeline_mode<synchronous>, transform_indices = @transform_4, window_bounds = array<i64: 2, 128, 128>}, {pipeline_mode = #tpu.pipeline_mode<synchronous>, transform_indices = @transform_5, window_bounds = array<i64: 2, 1, 128>}, {pipeline_mode = #tpu.pipeline_mode<synchronous>, transform_indices = @transform_6, window_bounds = array<i64: 128, 128>}, {transform_indices = @transform_7, window_bounds = array<i64: 4, 32, 128>}]} {
    %0 = tpu.iota {dimensions = array<i32: 0>} : vector<32x96xi32>
    %c0 = arith.constant 0 : index
    %c0_0 = arith.constant 0 : index
    %c0_1 = arith.constant 0 : index
    %1 = vector.load %arg1[%c0, %c0_0, %c0_1] : memref<4x1x96xi32, #tpu.memory_space<vmem>>, vector<1x1x96xi32>
    %2 = vector.shape_cast %1 : vector<1x1x96xi32> to vector<1x96xi32>
    %3 = vector.broadcast %2 : vector<1x96xi32> to vector<32x96xi32>
    %4 = arith.cmpi eq, %0, %3 : vector<32x96xi32>
    %5 = arith.extui %4 : vector<32x96xi1> to vector<32x96xi32>
    %6 = arith.sitofp %5 : vector<32x96xi32> to vector<32x96xf32>
    %7 = arith.truncf %6 : vector<32x96xf32> to vector<32x96xbf16>
    %c0_2 = arith.constant 0 : index
    %c0_3 = arith.constant 0 : index
    %c0_4 = arith.constant 0 : index
    %8 = vector.load %arg2[%c0_2, %c0_3, %c0_4] : memref<4x96x64xbf16, #tpu.memory_space<vmem>>, vector<1x96x64xbf16>
    %9 = vector.shape_cast %8 : vector<1x96x64xbf16> to vector<96x64xbf16>
    %cst = arith.constant dense<0.000000e+00> : vector<32x64xf32>
    %10 = tpu.matmul %7, %9, %cst {dimension_numbers = #tpu.dot_dimension_numbers<[1], [0], [0], [1], [0, 0, 1, 1], [], []>} : vector<32x96xbf16>, vector<96x64xbf16>, vector<32x64xf32> -> vector<32x64xf32>
    %c1 = arith.constant 1 : index
    %c0_5 = arith.constant 0 : index
    %c0_6 = arith.constant 0 : index
    %11 = vector.load %arg1[%c1, %c0_5, %c0_6] : memref<4x1x96xi32, #tpu.memory_space<vmem>>, vector<1x1x96xi32>
    %12 = vector.shape_cast %11 : vector<1x1x96xi32> to vector<1x96xi32>
    %13 = vector.broadcast %12 : vector<1x96xi32> to vector<32x96xi32>
    %14 = arith.cmpi eq, %0, %13 : vector<32x96xi32>
    %15 = arith.extui %14 : vector<32x96xi1> to vector<32x96xi32>
    %16 = arith.sitofp %15 : vector<32x96xi32> to vector<32x96xf32>
    %17 = arith.truncf %16 : vector<32x96xf32> to vector<32x96xbf16>
    %c1_7 = arith.constant 1 : index
    %c0_8 = arith.constant 0 : index
    %c0_9 = arith.constant 0 : index
    %18 = vector.load %arg2[%c1_7, %c0_8, %c0_9] : memref<4x96x64xbf16, #tpu.memory_space<vmem>>, vector<1x96x64xbf16>
    %19 = vector.shape_cast %18 : vector<1x96x64xbf16> to vector<96x64xbf16>
    %cst_10 = arith.constant dense<0.000000e+00> : vector<32x64xf32>
    %20 = tpu.matmul %17, %19, %cst_10 {dimension_numbers = #tpu.dot_dimension_numbers<[1], [0], [0], [1], [0, 0, 1, 1], [], []>} : vector<32x96xbf16>, vector<96x64xbf16>, vector<32x64xf32> -> vector<32x64xf32>
    %c2 = arith.constant 2 : index
    %c0_11 = arith.constant 0 : index
    %c0_12 = arith.constant 0 : index
    %21 = vector.load %arg1[%c2, %c0_11, %c0_12] : memref<4x1x96xi32, #tpu.memory_space<vmem>>, vector<1x1x96xi32>
    %22 = vector.shape_cast %21 : vector<1x1x96xi32> to vector<1x96xi32>
    %23 = vector.broadcast %22 : vector<1x96xi32> to vector<32x96xi32>
    %24 = arith.cmpi eq, %0, %23 : vector<32x96xi32>
    %25 = arith.extui %24 : vector<32x96xi1> to vector<32x96xi32>
    %26 = arith.sitofp %25 : vector<32x96xi32> to vector<32x96xf32>
    %27 = arith.truncf %26 : vector<32x96xf32> to vector<32x96xbf16>
    %c2_13 = arith.constant 2 : index
    %c0_14 = arith.constant 0 : index
    %c0_15 = arith.constant 0 : index
    %28 = vector.load %arg2[%c2_13, %c0_14, %c0_15] : memref<4x96x64xbf16, #tpu.memory_space<vmem>>, vector<1x96x64xbf16>
    %29 = vector.shape_cast %28 : vector<1x96x64xbf16> to vector<96x64xbf16>
    %cst_16 = arith.constant dense<0.000000e+00> : vector<32x64xf32>
    %30 = tpu.matmul %27, %29, %cst_16 {dimension_numbers = #tpu.dot_dimension_numbers<[1], [0], [0], [1], [0, 0, 1, 1], [], []>} : vector<32x96xbf16>, vector<96x64xbf16>, vector<32x64xf32> -> vector<32x64xf32>
    %c3 = arith.constant 3 : index
    %c0_17 = arith.constant 0 : index
    %c0_18 = arith.constant 0 : index
    %31 = vector.load %arg1[%c3, %c0_17, %c0_18] : memref<4x1x96xi32, #tpu.memory_space<vmem>>, vector<1x1x96xi32>
    %32 = vector.shape_cast %31 : vector<1x1x96xi32> to vector<1x96xi32>
    %33 = vector.broadcast %32 : vector<1x96xi32> to vector<32x96xi32>
    %34 = arith.cmpi eq, %0, %33 : vector<32x96xi32>
    %35 = arith.extui %34 : vector<32x96xi1> to vector<32x96xi32>
    %36 = arith.sitofp %35 : vector<32x96xi32> to vector<32x96xf32>
    %37 = arith.truncf %36 : vector<32x96xf32> to vector<32x96xbf16>
    %c3_19 = arith.constant 3 : index
    %c0_20 = arith.constant 0 : index
    %c0_21 = arith.constant 0 : index
    %38 = vector.load %arg2[%c3_19, %c0_20, %c0_21] : memref<4x96x64xbf16, #tpu.memory_space<vmem>>, vector<1x96x64xbf16>
    %39 = vector.shape_cast %38 : vector<1x96x64xbf16> to vector<96x64xbf16>
    %cst_22 = arith.constant dense<0.000000e+00> : vector<32x64xf32>
    %40 = tpu.matmul %37, %39, %cst_22 {dimension_numbers = #tpu.dot_dimension_numbers<[1], [0], [0], [1], [0, 0, 1, 1], [], []>} : vector<32x96xbf16>, vector<96x64xbf16>, vector<32x64xf32> -> vector<32x64xf32>
    %41 = tpu.concatenate %10, %20, %30, %40 in 0 : vector<32x64xf32>, vector<32x64xf32>, vector<32x64xf32>, vector<32x64xf32> -> vector<128x64xf32>
    %42 = arith.truncf %41 : vector<128x64xf32> to vector<128x64xbf16>
    %c0_23 = arith.constant 0 : index
    %c0_24 = arith.constant 0 : index
    %43 = vector.load %arg3[%c0_23, %c0_24] : memref<64x128xbf16, #tpu.memory_space<vmem>>, vector<64x128xbf16>
    %cst_25 = arith.constant dense<0.000000e+00> : vector<128x128xf32>
    %44 = tpu.matmul %42, %43, %cst_25 {dimension_numbers = #tpu.dot_dimension_numbers<[1], [0], [0], [1], [0, 0, 1, 1], [], []>} : vector<128x64xbf16>, vector<64x128xbf16>, vector<128x128xf32> -> vector<128x128xf32>
    %c0_26 = arith.constant 0 : index
    %c0_27 = arith.constant 0 : index
    %45 = vector.load %arg4[%c0_26, %c0_27] : memref<1x128xf32, #tpu.memory_space<vmem>>, vector<1x128xf32>
    %46 = vector.broadcast %45 : vector<1x128xf32> to vector<128x128xf32>
    %47 = arith.addf %44, %46 : vector<128x128xf32>
    %48 = arith.truncf %47 : vector<128x128xf32> to vector<128x128xbf16>
    %c0_28 = arith.constant 0 : index
    %c0_29 = arith.constant 0 : index
    %c0_30 = arith.constant 0 : index
    %49 = vector.load %arg5[%c0_28, %c0_29, %c0_30] : memref<2x128x128xbf16, #tpu.memory_space<vmem>>, vector<1x128x128xbf16>
    %50 = vector.shape_cast %49 : vector<1x128x128xbf16> to vector<128x128xbf16>
    %cst_31 = arith.constant dense<0.000000e+00> : vector<128x128xf32>
    %51 = tpu.matmul %48, %50, %cst_31 {dimension_numbers = #tpu.dot_dimension_numbers<[1], [0], [0], [1], [0, 0, 1, 1], [], []>} : vector<128x128xbf16>, vector<128x128xbf16>, vector<128x128xf32> -> vector<128x128xf32>
    %c0_32 = arith.constant 0 : index
    %c0_33 = arith.constant 0 : index
    %c0_34 = arith.constant 0 : index
    %52 = vector.load %arg6[%c0_32, %c0_33, %c0_34] : memref<2x1x128xf32, #tpu.memory_space<vmem>>, vector<1x1x128xf32>
    %53 = vector.shape_cast %52 : vector<1x1x128xf32> to vector<1x128xf32>
    %54 = vector.broadcast %53 : vector<1x128xf32> to vector<128x128xf32>
    %55 = arith.addf %51, %54 : vector<128x128xf32>
    %cst_35 = arith.constant 0.000000e+00 : f32
    %56 = vector.broadcast %cst_35 : f32 to vector<128x128xf32>
    %57 = arith.subf %56, %55 : vector<128x128xf32>
    %58 = math.exp %57 : vector<128x128xf32>
    %cst_36 = arith.constant 1.000000e+00 : f32
    %59 = vector.broadcast %cst_36 : f32 to vector<128x128xf32>
    %60 = arith.addf %59, %58 : vector<128x128xf32>
    %61 = tpu.reciprocal %60 {approx = true} : vector<128x128xf32> -> vector<128x128xf32>
    %62 = arith.mulf %55, %61 : vector<128x128xf32>
    %63 = arith.truncf %62 : vector<128x128xf32> to vector<128x128xbf16>
    %c1_37 = arith.constant 1 : index
    %c0_38 = arith.constant 0 : index
    %c0_39 = arith.constant 0 : index
    %64 = vector.load %arg5[%c1_37, %c0_38, %c0_39] : memref<2x128x128xbf16, #tpu.memory_space<vmem>>, vector<1x128x128xbf16>
    %65 = vector.shape_cast %64 : vector<1x128x128xbf16> to vector<128x128xbf16>
    %cst_40 = arith.constant dense<0.000000e+00> : vector<128x128xf32>
    %66 = tpu.matmul %63, %65, %cst_40 {dimension_numbers = #tpu.dot_dimension_numbers<[1], [0], [0], [1], [0, 0, 1, 1], [], []>} : vector<128x128xbf16>, vector<128x128xbf16>, vector<128x128xf32> -> vector<128x128xf32>
    %c1_41 = arith.constant 1 : index
    %c0_42 = arith.constant 0 : index
    %c0_43 = arith.constant 0 : index
    %67 = vector.load %arg6[%c1_41, %c0_42, %c0_43] : memref<2x1x128xf32, #tpu.memory_space<vmem>>, vector<1x1x128xf32>
    %68 = vector.shape_cast %67 : vector<1x1x128xf32> to vector<1x128xf32>
    %69 = vector.broadcast %68 : vector<1x128xf32> to vector<128x128xf32>
    %70 = arith.addf %66, %69 : vector<128x128xf32>
    %cst_44 = arith.constant 0.000000e+00 : f32
    %71 = vector.broadcast %cst_44 : f32 to vector<128x128xf32>
    %72 = arith.subf %71, %70 : vector<128x128xf32>
    %73 = math.exp %72 : vector<128x128xf32>
    %cst_45 = arith.constant 1.000000e+00 : f32
    %74 = vector.broadcast %cst_45 : f32 to vector<128x128xf32>
    %75 = arith.addf %74, %73 : vector<128x128xf32>
    %76 = tpu.reciprocal %75 {approx = true} : vector<128x128xf32> -> vector<128x128xf32>
    %77 = arith.mulf %70, %76 : vector<128x128xf32>
    %78 = arith.truncf %77 : vector<128x128xf32> to vector<128x128xbf16>
    %c0_46 = arith.constant 0 : index
    %c0_47 = arith.constant 0 : index
    %79 = vector.load %arg7[%c0_46, %c0_47] : memref<128x128xbf16, #tpu.memory_space<vmem>>, vector<128x128xbf16>
    %cst_48 = arith.constant dense<0.000000e+00> : vector<128x128xf32>
    %80 = tpu.matmul %78, %79, %cst_48 {dimension_numbers = #tpu.dot_dimension_numbers<[1], [0], [0], [1], [0, 0, 1, 1], [], []>} : vector<128x128xbf16>, vector<128x128xbf16>, vector<128x128xf32> -> vector<128x128xf32>
    %81 = vector.extract_strided_slice %80 {offsets = [0, 0], sizes = [32, 128], strides = [1, 1]} : vector<128x128xf32> to vector<32x128xf32>
    %c0_49 = arith.constant 0 : index
    %c0_50 = arith.constant 0 : index
    %c0_51 = arith.constant 0 : index
    %82 = vector.load %arg8[%c0_49, %c0_50, %c0_51] : memref<4x32x128xf32, #tpu.memory_space<vmem>>, vector<1x32x128xf32>
    %83 = vector.shape_cast %82 : vector<1x32x128xf32> to vector<32x128xf32>
    %84 = vector.shape_cast %81 : vector<32x128xf32> to vector<1x32x128xf32>
    tpu.vector_store %arg8[%c0_49, %c0_50, %c0_51], %84 {strides = array<i32>} : memref<4x32x128xf32, #tpu.memory_space<vmem>>, vector<1x32x128xf32>,
    %85 = vector.extract_strided_slice %80 {offsets = [32, 0], sizes = [32, 128], strides = [1, 1]} : vector<128x128xf32> to vector<32x128xf32>
    %c1_52 = arith.constant 1 : index
    %c0_53 = arith.constant 0 : index
    %c0_54 = arith.constant 0 : index
    %86 = vector.load %arg8[%c1_52, %c0_53, %c0_54] : memref<4x32x128xf32, #tpu.memory_space<vmem>>, vector<1x32x128xf32>
    %87 = vector.shape_cast %86 : vector<1x32x128xf32> to vector<32x128xf32>
    %88 = vector.shape_cast %85 : vector<32x128xf32> to vector<1x32x128xf32>
    tpu.vector_store %arg8[%c1_52, %c0_53, %c0_54], %88 {strides = array<i32>} : memref<4x32x128xf32, #tpu.memory_space<vmem>>, vector<1x32x128xf32>,
    %89 = vector.extract_strided_slice %80 {offsets = [64, 0], sizes = [32, 128], strides = [1, 1]} : vector<128x128xf32> to vector<32x128xf32>
    %c2_55 = arith.constant 2 : index
    %c0_56 = arith.constant 0 : index
    %c0_57 = arith.constant 0 : index
    %90 = vector.load %arg8[%c2_55, %c0_56, %c0_57] : memref<4x32x128xf32, #tpu.memory_space<vmem>>, vector<1x32x128xf32>
    %91 = vector.shape_cast %90 : vector<1x32x128xf32> to vector<32x128xf32>
    %92 = vector.shape_cast %89 : vector<32x128xf32> to vector<1x32x128xf32>
    tpu.vector_store %arg8[%c2_55, %c0_56, %c0_57], %92 {strides = array<i32>} : memref<4x32x128xf32, #tpu.memory_space<vmem>>, vector<1x32x128xf32>,
    %93 = vector.extract_strided_slice %80 {offsets = [96, 0], sizes = [32, 128], strides = [1, 1]} : vector<128x128xf32> to vector<32x128xf32>
    %c3_58 = arith.constant 3 : index
    %c0_59 = arith.constant 0 : index
    %c0_60 = arith.constant 0 : index
    %94 = vector.load %arg8[%c3_58, %c0_59, %c0_60] : memref<4x32x128xf32, #tpu.memory_space<vmem>>, vector<1x32x128xf32>
    %95 = vector.shape_cast %94 : vector<1x32x128xf32> to vector<32x128xf32>
    %96 = vector.shape_cast %93 : vector<32x128xf32> to vector<1x32x128xf32>
    tpu.vector_store %arg8[%c3_58, %c0_59, %c0_60], %96 {strides = array<i32>} : memref<4x32x128xf32, #tpu.memory_space<vmem>>, vector<1x32x128xf32>,
    return
  }
  func.func @transform_0(%arg0: i32) -> (i32, i32, i32) {
    %c0_i32 = arith.constant 0 : i32
    %c0_i32_0 = arith.constant 0 : i32
    %c0_i32_1 = arith.constant 0 : i32
    return %arg0, %c0_i32, %c0_i32_0 : i32, i32, i32
  }
  func.func @transform_1(%arg0: i32) -> (i32, i32, i32) {
    %c0_i32 = arith.constant 0 : i32
    %c0_i32_0 = arith.constant 0 : i32
    %c0_i32_1 = arith.constant 0 : i32
    return %arg0, %c0_i32, %c0_i32_0 : i32, i32, i32
  }
  func.func @transform_2(%arg0: i32) -> (i32, i32) {
    %c0_i32 = arith.constant 0 : i32
    %c0_i32_0 = arith.constant 0 : i32
    %c0_i32_1 = arith.constant 0 : i32
    return %c0_i32, %c0_i32_0 : i32, i32
  }
  func.func @transform_3(%arg0: i32) -> (i32, i32) {
    %c0_i32 = arith.constant 0 : i32
    %c0_i32_0 = arith.constant 0 : i32
    %c0_i32_1 = arith.constant 0 : i32
    return %c0_i32, %c0_i32_0 : i32, i32
  }
  func.func @transform_4(%arg0: i32) -> (i32, i32, i32) {
    %c0_i32 = arith.constant 0 : i32
    %c0_i32_0 = arith.constant 0 : i32
    %c0_i32_1 = arith.constant 0 : i32
    %c0_i32_2 = arith.constant 0 : i32
    return %c0_i32, %c0_i32_0, %c0_i32_1 : i32, i32, i32
  }
  func.func @transform_5(%arg0: i32) -> (i32, i32, i32) {
    %c0_i32 = arith.constant 0 : i32
    %c0_i32_0 = arith.constant 0 : i32
    %c0_i32_1 = arith.constant 0 : i32
    %c0_i32_2 = arith.constant 0 : i32
    return %c0_i32, %c0_i32_0, %c0_i32_1 : i32, i32, i32
  }
  func.func @transform_6(%arg0: i32) -> (i32, i32) {
    %c0_i32 = arith.constant 0 : i32
    %c0_i32_0 = arith.constant 0 : i32
    %c0_i32_1 = arith.constant 0 : i32
    return %c0_i32, %c0_i32_0 : i32, i32
  }
  func.func @transform_7(%arg0: i32) -> (i32, i32, i32) {
    %c0_i32 = arith.constant 0 : i32
    %c0_i32_0 = arith.constant 0 : i32
    %c0_i32_1 = arith.constant 0 : i32
    return %arg0, %c0_i32, %c0_i32_0 : i32, i32, i32
  }
}

</mosaic_0001>

<bundles_post_ra>
// kernel: tpu_custom_call.1
= control target key start
LH: loop header
LB: loop body
LE: loop exit
PB: predicated region body
PF: predicated region fallthrough
CT: control target
= control target key end

     0   :  { %12 = vsyncpa [#allocation3], 0  ;;  %s3075_s0 = inlined_call_operand.vmem [shape: s32[8,1,96], index: 0, kind: input, shape index: {}]   ;;  %s3076_s1 = inlined_call_operand.vmem [shape: bf16[8,96,64], index: 1, kind: input, shape index: {}]   ;;  %s3077_s2 = inlined_call_operand.vmem [shape: bf16[64,128], index: 2, kind: input, shape index: {}]   ;;  %s3078_s3 = inlined_call_operand.vmem [shape: f32[1,128], index: 3, kind: input, shape index: {}]   ;;  %s3079_s4 = inlined_call_operand.vmem [shape: bf16[2,128,128], index: 4, kind: input, shape index: {}]   ;;  %s3080_s5 = inlined_call_operand.vmem [shape: f32[2,1,128], index: 5, kind: input, shape index: {}]   ;;  %s3081_s6 = inlined_call_operand.vmem [shape: bf16[128,128], index: 6, kind: input, shape index: {}]   ;;  %s3082_s7 = inlined_call_operand.hbm [shape: f32[8,32,128], index: 7, kind: output, shape index: {}]  }
   0x1   :  { %14 = vsyncpa [#allocation3 + $0x1], 0  ;;  %s2588_s24 = smov 0   ;;  %s2590_s25 = smov 0  }
   0x2   :  { %s2592_s26 = smov 0   ;;  %s2594_s27 = smov 0  }
   0x3 LB: > { %s2609_s28 = sadd.s32 4294967295, %s2542_s27   ;;  %s1792_s29 = sadd.s32 4294967294, %s2542_s27   ;;  %s2542_s27 = sphi %s2594_s27, %s3088_s27   ;;  %s2538_s26 = sphi %s2592_s26, %s3087_s26   ;;  %s2534_s25 = sphi %s2590_s25, %s3086_s25   ;;  %s2530_s24 = sphi %s2588_s24, %s3085_s24  }
   0x4   : > { %s2613_s30 = sadd.s32 1, %s2542_s27   ;;  %s184_s8 = sadd.s32 1, %s2538_s26 }
   0x5   : > { %s181_s9 = ssub.s32 %s2542_s27, %s2613_s30  ;;  %p194_p0 = scmp.ne.s32.totalorder %s2538_s26, %s2534_s25 }
   0x6   : > { %p182_p1 = scmp.eq.s32.totalorder %s181_s9, 0  ;;  %p195_p2 = scmp.eq.s32.totalorder %s2609_s28, 1 }
   0x7   : > { %p200_p3 = scmp.ne.s32.totalorder %s2534_s25, %s2530_s24  ;;  %p201_p4 = scmp.eq.s32.totalorder %s1792_s29, 1 }
   0x8   : > { %s2624_s10 = scalar_select %p182_p1, %s2538_s26, %s184_s8  }
   0x9   : > { %p2626_p5 = por %p195_p2, %p194_p0  ;;  %p2630_p6 = por %p201_p4, %p200_p3 }
   0xa   : > { %p1795_p7 = scmp.ge.s32.totalorder %s2542_s27, 1  ;;  %p252_p8 = scmp.lt.s32.totalorder %s2542_s27, 3 }
   0xc   : > { %p253_p9 = pnand %p1795_p7, %p252_p8 }
   0xd   : > { %s1797_s13 = sshll.u32 (!%p253_p9), %s2609_s28, 2  ;;  %s1966_s16 = sshll.u32 (!%p253_p9), %s2609_s28, 11 }
   0xe   : > { %256 = sbr.rel (%p253_p9) target bundleno = 1180 (0x49c), region = 48  ;;  %p290_p10 = scmp.lt.s32.totalorder (!%p253_p9), %s1797_s13, 7 }
   0xf   : > { %s2545_s22 = smov (!%p253_p9), [#allocation2]  }
  0x10   : > { %s2486_s23 = sshll.u32 (!%p253_p9), %s2545_s22, 4  ;;  %s2487_s23 = int_to_ptr.vmem [resolvable:$false] %s2486_s23 }
  0x11   : > { %s2488_s29 = scalar_lea.vmem (!%p253_p9), %s2487_s23, 4096 }
  0x13   : > { %v303_v0 = vlaneseq  ;;  %s3090_s13 = smov (!%p290_p10, %s1797_s13), 7  ;;  %v2544_v6 = vmov 0.0   ;;  %vm375_vm3 = vcmask 785408   ;;  %v2326_v56 = vld [vmem:[%s3077_s2 + $0x18] sm:$0xff]   ;;  %v2327_v59 = vld [vmem:[%s3077_s2 + $0x10] sm:$0xff]   ;;  %v2328_v60 = vld [vmem:[%s3077_s2 + $0x8] sm:$0xff]  }
  0x14   : > { %s2259_s14 = smul.u32 48, %s3090_s13  ;;  %s2645_s17 = scalar_lea.vmem %s3075_s0, %s3090_s13  ;;  %v2329_v61 = vld [vmem:[%s3077_s2] sm:$0xff]   ;;  %v2330_v62 = vld [vmem:[%s3079_s4 + $0x38] sm:$0xff]   ;;  %v2331_v63 = vld [vmem:[%s3079_s4 + $0x30] sm:$0xff]  }
  0x15   : > { %v2637_v1 = vshrl.u32 %v303_v0, 7  ;;  %v1800_v3 = vld [vmem:[%s2645_s17] ss:$0 sm:$0xff]  ;;  %v1814_v4 = vld [vmem:[%s2645_s17 + $0x1] ss:$0 sm:$0xff]  ;;  %v2332_v0 = vld [vmem:[%s3079_s4 + $0x28] sm:$0xff]  }
  0x16   : > { %s2652_s20 = scalar_lea.vmem %s3076_s1, %s2259_s14  ;;  %v2681_v24 = vld [vmem:[%s2645_s17 + $0x2] ss:$0 sm:$0xff]  ;;  %v2686_v25 = vld [vmem:[%s2645_s17 + $0x3] ss:$0 sm:$0xff]  ;;  %s286_s13 = sand.u32 1, %s2534_s25  }
  0x17   : > { %v2640_v2 = vadd.s32 8, %v2637_v1  ;;  %vm313_vm0 = vcmp.eq.s32.totalorder %v2637_v1, %v1800_v3  ;;  %v2302_v5 = vld [vmem:[%s2652_s20 + $0x28] sm:$0xff]   ;;  %v2303_v8 = vld [vmem:[%s2652_s20 + $0x58] sm:$0xff]   ;;  %vm437_vm2 = vcmp.eq.s32.totalorder %v2637_v1, %v1814_v4  ;;  %v2304_v10 = vld [vmem:[%s2652_s20 + $0x20] sm:$0xff]   ;;  %v2673_v20 = vadd.s32 16, %v2637_v1  ;;  %s1796_s14 = sshll.u32 %s286_s13, 7 }
  0x18   : > { %v1801_v7 = vsel %vm313_vm0, 1.0, %v2544_v6  ;;  %2059 = vmatprep.subr.bf16.mxu0 %v2302_v5  ;;  %2075 = vmatprep.subr.bf16.mxu1 %v2303_v8  ;;  %v2305_v12 = vld [vmem:[%s2652_s20 + $0x50] sm:$0xff]   ;;  %v2306_v13 = vld [vmem:[%s2652_s20 + $0x18] sm:$0xff]   ;;  %v1815_v14 = vsel %vm437_vm2, 1.0, %v2544_v6  ;;  %v2307_v15 = vld [vmem:[%s2652_s20 + $0x48] sm:$0xff]   ;;  %v2676_v21 = vadd.s32 24, %v2637_v1  ;;  %vm561_vm9 = vcmp.eq.s32.totalorder %v2637_v1, %v2681_v24 }
  0x19   : > { %vm314_vm1 = vcmp.eq.s32.totalorder %v2640_v2, %v1800_v3  ;;  %vm438_vm4 = vcmp.eq.s32.totalorder %v2640_v2, %v1814_v4  ;;  %2060 = vmatpush3.bf16.msra.mxu0 %v2302_v5  ;;  %2076 = vmatpush3.bf16.msra.mxu1 %v2303_v8  ;;  %v2308_v18 = vld [vmem:[%s2652_s20 + $0x10] sm:$0xff]   ;;  %v2309_v19 = vld [vmem:[%s2652_s20 + $0x40] sm:$0xff]   ;;  %v2310_v22 = vld [vmem:[%s2652_s20 + $0x8] sm:$0xff]   ;;  %vm315_vm5 = vcmp.eq.s32.totalorder %v2673_v20, %v1800_v3  ;;  %v1841_v33 = vsel %vm561_vm9, 1.0, %v2544_v6  ;;  %s3006_s15 = scalar_lea.vmem [#allocation2], %s1796_s14  ;;  %s3035_s21 = scalar_lea.sflag [#allocation3], %s286_s13 }
  0x1a   : > { %v1802_v9 = vsel %vm314_vm1, 1.0, %v2544_v6  ;;  %2061 = vmatprep.subr.bf16.mxu0 %v2304_v10  ;;  %2077 = vmatprep.subr.bf16.mxu1 %v2305_v12  ;;  %v1816_v16 = vsel %vm438_vm4, 1.0, %v2544_v6  ;;  %v2311_v23 = vld [vmem:[%s2652_s20 + $0x38] sm:$0xff]   ;;  %vm316_vm6 = vcmp.eq.s32.totalorder %v2676_v21, %v1800_v3  ;;  %v2312_v26 = vld [vmem:[%s2652_s20] sm:$0xff]   ;;  %vm439_vm7 = vcmp.eq.s32.totalorder %v2673_v20, %v1814_v4  ;;  %v2313_v27 = vld [vmem:[%s2652_s20 + $0x30] sm:$0xff]   ;;  %s1721_s17 = sshll.u32 %s3006_s15, 4  ;;  %s3029_s17 = int_to_ptr.vmem [resolvable:$true] %s1721_s17 }
  0x1b   : > { %v325_v11 = vpack.c.bf16 %v1802_v9, %v1801_v7  ;;  %v449_v17 = vpack.c.bf16 %v1816_v16, %v1815_v14  ;;  %vm440_vm8 = vcmp.eq.s32.totalorder %v2676_v21, %v1814_v4  ;;  %v1803_v28 = vsel %vm315_vm5, 1.0, %v2544_v6  ;;  %v2314_v32 = vld [vmem:[%s2652_s20 + $0x88] sm:$0xff]   ;;  %v2315_v34 = vld [vmem:[%s2652_s20 + $0xb8] sm:$0xff]   ;;  %v2316_v37 = vld [vmem:[%s2652_s20 + $0x80] sm:$0xff]   ;;  %s2482_s28 = scalar_lea.vmem %s3029_s17, 2048  ;;  %p2489_p0 = scmp.lt.s32.totalorder %s3029_s17, %s2487_s23 }
  0x1c   : > { %v1804_v29 = vsel %vm316_vm6, 1.0, %v2544_v6  ;;  %vm562_vm10 = vcmp.eq.s32.totalorder %v2640_v2, %v2681_v24  ;;  %v1817_v30 = vsel %vm439_vm7, 1.0, %v2544_v6  ;;  %v1818_v31 = vsel %vm440_vm8, 1.0, %v2544_v6  ;;  %v2317_v40 = vld [vmem:[%s2652_s20 + $0xb0] sm:$0xff]   ;;  %v2318_v43 = vld [vmem:[%s2652_s20 + $0x78] sm:$0xff]   ;;  %v2319_v45 = vld [vmem:[%s2652_s20 + $0xa8] sm:$0xff]   ;;  %p2483_p11 = scmp.ne.s32.totalorder %s3029_s17, %s2482_s28  ;;  %p2490_p1 = scmp.lt.s32.totalorder %s2488_s29, %s2482_s28 }
  0x1d   : > { %2071 = vmatprep.mubr.msk.bf16.mxu0 %vm375_vm3, %v325_v11  ;;  %2062 = vmatpush3.bf16.msra.mxu0 %v2304_v10  ;;  %vm685_vm11 = vcmp.eq.s32.totalorder %v2637_v1, %v2686_v25  ;;  %vm686_vm12 = vcmp.eq.s32.totalorder %v2640_v2, %v2686_v25  ;;  %v1842_v35 = vsel %vm562_vm10, 1.0, %v2544_v6  ;;  %v326_v36 = vpack.c.bf16 %v1804_v29, %v1803_v28  ;;  %v2320_v46 = vld [vmem:[%s2652_s20 + $0x70] sm:$0xff]   ;;  %v2321_v47 = vld [vmem:[%s2652_s20 + $0xa0] sm:$0xff]   ;;  %v2322_v48 = vld [vmem:[%s2652_s20 + $0x68] sm:$0xff]  }
  0x1e   : > { %2078 = vmatpush3.bf16.msra.mxu1 %v2305_v12  ;;  %2063 = vmatprep.subr.bf16.mxu0 %v2306_v13  ;;  %v1867_v38 = vsel %vm685_vm11, 1.0, %v2544_v6  ;;  %v450_v39 = vpack.c.bf16 %v1818_v31, %v1817_v30  ;;  %v1868_v41 = vsel %vm686_vm12, 1.0, %v2544_v6  ;;  %v573_v42 = vpack.c.bf16 %v1842_v35, %v1841_v33  ;;  %v2323_v49 = vld [vmem:[%s2652_s20 + $0x98] sm:$0xff]   ;;  %v2324_v50 = vld [vmem:[%s2652_s20 + $0x60] sm:$0xff]   ;;  %v2325_v51 = vld [vmem:[%s2652_s20 + $0x90] sm:$0xff]   ;;  %s3027_s20 = scalar_lea.hbm %s3082_s7, %s1966_s16  ;;  %p2484_p12 = pnand %p2483_p11, %p2626_p5 }
  0x1f   : > { %2079 = vmatprep.subr.bf16.mxu1 %v2307_v15  ;;  %2087 = vmatprep.mubr.msk.bf16.mxu1 %vm375_vm3, %v449_v17  ;;  %v697_v44 = vpack.c.bf16 %v1868_v41, %v1867_v38  ;;  %vm563_vm13 = vcmp.eq.s32.totalorder %v2673_v20, %v2681_v24  ;;  %vm564_vm14 = vcmp.eq.s32.totalorder %v2676_v21, %v2681_v24  ;;  %v2333_v1 = vld [vmem:[%s3079_s4 + $0x20] sm:$0xff]   ;;  %v2334_v2 = vld [vmem:[%s3079_s4 + $0x18] sm:$0xff]   ;;  %vm850_vm1 = vcmask 523264   ;;  %v2336_v28 = vld [vmem:[%s3079_s4 + $0x8] sm:$0xff]   ;;  %p2491_p2 = por %p2490_p1, %p2489_p0 }
  0x20   : > { %vm687_vm15 = vcmp.eq.s32.totalorder %v2673_v20, %v2686_v25  ;;  %vm688_vm0 = vcmp.eq.s32.totalorder %v2676_v21, %v2686_v25  ;;  %v1843_v52 = vsel %vm563_vm13, 1.0, %v2544_v6  ;;  %v1844_v53 = vsel %vm564_vm14, 1.0, %v2544_v6  ;;  %v2337_v29 = vld [vmem:[%s3079_s4] sm:$0xff]   ;;  %p2485_p13 = pneg %p2484_p12 }
  0x21   : > { %2064 = vmatpush3.bf16.msra.mxu0 %v2306_v13  ;;  %v1869_v54 = vsel %vm687_vm15, 1.0, %v2544_v6  ;;  %v1870_v55 = vsel %vm688_vm0, 1.0, %v2544_v6  ;;  %v574_v57 = vpack.c.bf16 %v1844_v53, %v1843_v52  ;;  %v1891_v33 = vld [vmem:[%s3078_s3] ss:$0 sm:$0xff] }
  0x22   : > { %2080 = vmatpush3.bf16.msra.mxu1 %v2307_v15  ;;  %2065 = vmatprep.subr.bf16.mxu0 %v2308_v18  ;;  %v698_v58 = vpack.c.bf16 %v1870_v55, %v1869_v54  ;;  %p2492_p3 = pnand %p2491_p2, %p2485_p13 }
  0x23   : > { %2081 = vmatprep.subr.bf16.mxu1 %v2309_v19 }
  0x25   : > { %2066 = vmatpush3.bf16.msra.mxu0 %v2308_v18 }
  0x26   : > { %2082 = vmatpush3.bf16.msra.mxu1 %v2309_v19  ;;  %2067 = vmatprep.subr.bf16.mxu0 %v2310_v22 }
  0x27   : > { %2083 = vmatprep.subr.bf16.mxu1 %v2311_v23 }
  0x29   : > { %2068 = vmatpush3.bf16.msra.mxu0 %v2310_v22 }
  0x2a   : > { %2084 = vmatpush3.bf16.msra.mxu1 %v2311_v23  ;;  %2069 = vmatprep.subr.bf16.mxu0 %v2312_v26 }
  0x2b   : > { %2085 = vmatprep.subr.bf16.mxu1 %v2313_v27 }
  0x2d   : > { %2070 = vmatpush3.bf16.msra.mxu0 %v2312_v26 }
  0x2e   : > { %2086 = vmatpush3.bf16.msra.mxu1 %v2313_v27  ;;  %2091 = vmatprep.subr.bf16.mxu0 %v2314_v32  ;;  %v2335_v27 = vld [vmem:[%s3079_s4 + $0x10] sm:$0xff]  }
  0x2f   : > { %2107 = vmatprep.subr.bf16.mxu1 %v2315_v34 }
  0x30   : > { %2072 = vmatmul.mubr.msk.bf16.vlgmr.msra.gmra.mxu0 %vm375_vm3, %v326_v36 }
  0x31   : > { %2092 = vmatpush3.bf16.msra.mxu0 %v2314_v32  ;;  %2088 = vmatmul.mubr.msk.bf16.vlgmr.msra.gmra.mxu1 %vm375_vm3, %v450_v39 }
  0x32   : > { %2108 = vmatpush3.bf16.msra.mxu1 %v2315_v34  ;;  %2093 = vmatprep.subr.bf16.mxu0 %v2316_v37 }
  0x33   : > { %2109 = vmatprep.subr.bf16.mxu1 %v2317_v40  ;;  %2103 = vmatprep.mubr.msk.bf16.mxu0 %vm375_vm3, %v573_v42 }
  0x34   : > { %2119 = vmatprep.mubr.msk.bf16.mxu1 %vm375_vm3, %v697_v44 }
  0x35   : > { %2094 = vmatpush3.bf16.msra.mxu0 %v2316_v37 }
  0x36   : > { %2110 = vmatpush3.bf16.msra.mxu1 %v2317_v40  ;;  %2095 = vmatprep.subr.bf16.mxu0 %v2318_v43 }
  0x37   : > { %2111 = vmatprep.subr.bf16.mxu1 %v2319_v45 }
  0x39   : > { %2096 = vmatpush3.bf16.msra.mxu0 %v2318_v43 }
  0x3a   : > { %2112 = vmatpush3.bf16.msra.mxu1 %v2319_v45  ;;  %2097 = vmatprep.subr.bf16.mxu0 %v2320_v46 }
  0x3b   : > { %2113 = vmatprep.subr.bf16.mxu1 %v2321_v47 }
  0x3d   : > { %2098 = vmatpush3.bf16.msra.mxu0 %v2320_v46 }
  0x3e   : > { %2114 = vmatpush3.bf16.msra.mxu1 %v2321_v47  ;;  %2099 = vmatprep.subr.bf16.mxu0 %v2322_v48 }
  0x3f   : > { %2115 = vmatprep.subr.bf16.mxu1 %v2323_v49 }
  0x41   : > { %2100 = vmatpush3.bf16.msra.mxu0 %v2322_v48 }
  0x42   : > { %2116 = vmatpush3.bf16.msra.mxu1 %v2323_v49  ;;  %2101 = vmatprep.subr.bf16.mxu0 %v2324_v50 }
  0x43   : > { %2117 = vmatprep.subr.bf16.mxu1 %v2325_v51 }
  0x45   : > { %2102 = vmatpush3.bf16.msra.mxu0 %v2324_v50 }
  0x46   : > { %2118 = vmatpush3.bf16.msra.mxu1 %v2325_v51  ;;  %2123 = vmatprep.subr.bf16.mxu0 %v2326_v56 }
  0x47   : > { %2147 = vmatprep.subr.bf16.mxu1 %v2330_v62 }
  0x48   : > { %2104 = vmatmul.mubr.msk.bf16.vlgmr.msra.gmra.mxu0 %vm375_vm3, %v574_v57 }
  0x49   : > { %2120 = vmatmul.mubr.msk.bf16.vlgmr.msra.gmra.mxu1 %vm375_vm3, %v698_v58  ;;  %2124 = vmatpush3.bf16.msra.mxu0 %v2326_v56 }
  0x4a   : > { %2125 = vmatprep.subr.bf16.mxu0 %v2327_v59  ;;  %2148 = vmatpush3.bf16.msra.mxu1 %v2330_v62 }
  0x4b   : > { %2149 = vmatprep.subr.bf16.mxu1 %v2331_v63 }
  0x4d   : > { %2126 = vmatpush3.bf16.msra.mxu0 %v2327_v59 }
  0x4e   : > { %2127 = vmatprep.subr.bf16.mxu0 %v2328_v60  ;;  %2150 = vmatpush3.bf16.msra.mxu1 %v2331_v63 }
  0x4f   : > { %2151 = vmatprep.subr.bf16.mxu1 %v2332_v0 }
  0x51   : > { %2128 = vmatpush3.bf16.msra.mxu0 %v2328_v60 }
  0x52   : > { %2129 = vmatprep.subr.bf16.mxu0 %v2329_v61  ;;  %2152 = vmatpush3.bf16.msra.mxu1 %v2332_v0 }
  0x53   : > { %2153 = vmatprep.subr.bf16.mxu1 %v2333_v1 }
  0x55   : > { %2130 = vmatpush3.bf16.msra.mxu0 %v2329_v61 }
  0x56   : > { %2154 = vmatpush3.bf16.msra.mxu1 %v2333_v1 }
  0x57   : > { %2155 = vmatprep.subr.bf16.mxu1 %v2334_v2 }
  0x5a   : > { %2156 = vmatpush3.bf16.msra.mxu1 %v2334_v2 }
  0x5b   : > { %2157 = vmatprep.subr.bf16.mxu1 %v2335_v27 }
  0x5e   : > { %2158 = vmatpush3.bf16.msra.mxu1 %v2335_v27 }
  0x5f   : > { %2159 = vmatprep.subr.bf16.mxu1 %v2336_v28 }
  0x62   : > { %2160 = vmatpush3.bf16.msra.mxu1 %v2336_v28 }
  0x63   : > { %2161 = vmatprep.subr.bf16.mxu1 %v2337_v29 }
  0x66   : > { %2162 = vmatpush3.bf16.msra.mxu1 %v2337_v29 }
  0xf0   : > { %v2073_v3 = vpop.f32.mrf.mxu0 }
  0xf1   : > { %v2089_v4 = vpop.f32.mrf.mxu1 }
  0xf2   : > { %v416_v5 = vpop.f32.mrf.mxu0 }
  0xf3   : > { %v540_v6 = vpop.f32.mrf.mxu1 }
  0xf4   : > { %v2074_v7 = vpop.f32.mrf.mxu0 }
  0xf5   : > { %v2090_v8 = vpop.f32.mrf.mxu1  ;;  %v804_v12 = vpack.c.bf16 %v2074_v7, %v2073_v3  ;;  %v2338_v7 = vld [vmem:[%s3079_s4 + $0x78] sm:$0xff]  }
  0xf6   : > { %v419_v9 = vpop.f32.mrf.mxu0  ;;  %v806_v14 = vpack.c.bf16 %v2090_v8, %v2089_v4  ;;  %2179 = vmatprep.subr.bf16.mxu0 %v2338_v7  ;;  %v2339_v8 = vld [vmem:[%s3079_s4 + $0x70] sm:$0xff]  }
  0xf7   : > { %v803_v10 = vpack.c.bf16 %v419_v9, %v416_v5  ;;  %v543_v11 = vpop.f32.mrf.mxu1  ;;  %v2340_v9 = vld [vmem:[%s3079_s4 + $0x68] sm:$0xff]  }
  0xf8   : > { %v805_v13 = vpack.c.bf16 %v543_v11, %v540_v6  ;;  %v2342_v11 = vld [vmem:[%s3079_s4 + $0x58] sm:$0xff]  }
  0xf9   : > { %2131 = vmatprep.mubr.msk.bf16.mxu0 %vm850_vm1, %v803_v10  ;;  %v2341_v10 = vld [vmem:[%s3079_s4 + $0x60] sm:$0xff]  }
  0xfa   : > { %2132 = vmatmul.mubr.msk.bf16.vlgmr.msra.gmra.mxu0 %vm850_vm1, %v804_v12  ;;  %v2343_v12 = vld [vmem:[%s3079_s4 + $0x50] sm:$0xff]  }
  0xfb   : > { %2135 = vmatprep.mubr.msk.bf16.mxu0 %vm850_vm1, %v805_v13  ;;  %2180 = vmatpush3.bf16.msra.mxu0 %v2338_v7  ;;  %v2344_v13 = vld [vmem:[%s3079_s4 + $0x48] sm:$0xff]  }
  0xfc   : > { %2181 = vmatprep.subr.bf16.mxu0 %v2339_v8 }
  0xff   : > { %2182 = vmatpush3.bf16.msra.mxu0 %v2339_v8 }
 0x100   : > { %2183 = vmatprep.subr.bf16.mxu0 %v2340_v9 }
 0x102   : > { %2136 = vmatmul.mubr.msk.bf16.gmra.mxu0 %vm850_vm1, %v806_v14  ;;  %v2345_v14 = vld [vmem:[%s3079_s4 + $0x40] sm:$0xff]  }
 0x103   : > { %2184 = vmatpush3.bf16.msra.mxu0 %v2340_v9 }
 0x104   : > { %2185 = vmatprep.subr.bf16.mxu0 %v2341_v10 }
 0x107   : > { %2186 = vmatpush3.bf16.msra.mxu0 %v2341_v10 }
 0x108   : > { %v2105_v15 = vpop.f32.mrf.mxu0  ;;  %2187 = vmatprep.subr.bf16.mxu0 %v2342_v11 }
 0x109   : > { %v2121_v16 = vpop.f32.mrf.mxu1 }
 0x10a   : > { %v664_v17 = vpop.f32.mrf.mxu0 }
 0x10b   : > { %v788_v18 = vpop.f32.mrf.mxu1  ;;  %2188 = vmatpush3.bf16.msra.mxu0 %v2342_v11 }
 0x10c   : > { %v2106_v19 = vpop.f32.mrf.mxu0  ;;  %2189 = vmatprep.subr.bf16.mxu0 %v2343_v12 }
 0x10d   : > { %v2122_v20 = vpop.f32.mrf.mxu1  ;;  %v808_v24 = vpack.c.bf16 %v2106_v19, %v2105_v15  ;;  %v2812_v15 = vld [vmem:[%s3080_s5] ss:$0 sm:$0xff] }
 0x10e   : > { %v667_v21 = vpop.f32.mrf.mxu0  ;;  %v810_v26 = vpack.c.bf16 %v2122_v20, %v2121_v16 }
 0x10f   : > { %v807_v22 = vpack.c.bf16 %v667_v21, %v664_v17  ;;  %v791_v23 = vpop.f32.mrf.mxu1  ;;  %2190 = vmatpush3.bf16.msra.mxu0 %v2343_v12 }
 0x110   : > { %v809_v25 = vpack.c.bf16 %v791_v23, %v788_v18  ;;  %2191 = vmatprep.subr.bf16.mxu0 %v2344_v13 }
 0x111   : > { %2139 = vmatprep.mubr.msk.bf16.mxu0 %vm850_vm1, %v807_v22 }
 0x112   : > { %2140 = vmatmul.mubr.msk.bf16.gmra.mxu0 %vm850_vm1, %v808_v24 }
 0x113   : > { %2143 = vmatprep.mubr.msk.bf16.mxu0 %vm850_vm1, %v809_v25  ;;  %2192 = vmatpush3.bf16.msra.mxu0 %v2344_v13 }
 0x114   : > { %2193 = vmatprep.subr.bf16.mxu0 %v2345_v14 }
 0x117   : > { %2194 = vmatpush3.bf16.msra.mxu0 %v2345_v14 }
 0x11a   : > { %2144 = vmatmul.mubr.msk.bf16.gmra.mxu0 %vm850_vm1, %v810_v26 }
 0x1ba   : > { %v2133_v30 = vpop.f32.mrf.mxu0 }
 0x1bb   : > { %v918_v38 = vadd.f32 %v2133_v30, %v1891_v33 }
 0x1bc   : > { %v909_v31 = vpop.f32.mrf.mxu0 }
 0x1bd   : > { %v910_v36 = vadd.f32 %v1891_v33, %v909_v31 }
 0x1be   : > { %v2134_v32 = vpop.f32.mrf.mxu0 }
 0x1bf   : > { %v921_v34 = vadd.f32 %v2134_v32, %v1891_v33 }
 0x1c0   : > { %v912_v35 = vpop.f32.mrf.mxu0 }
 0x1c1   : > { %v913_v37 = vadd.f32 %v1891_v33, %v912_v35  ;;  %v973_v41 = vpack.c.bf16 %v921_v34, %v918_v38 }
 0x1c2   : > { %v2137_v39 = vpop.f32.mrf.mxu0 }
 0x1c3   : > { %v972_v40 = vpack.c.bf16 %v913_v37, %v910_v36  ;;  %v934_v48 = vadd.f32 %v2137_v39, %v1891_v33 }
 0x1c4   : > { %v925_v42 = vpop.f32.mrf.mxu0 }
 0x1c5   : > { %2163 = vmatprep.mubr.bf16.mxu1 %v972_v40  ;;  %v926_v46 = vadd.f32 %v1891_v33, %v925_v42 }
 0x1c6   : > { %v2138_v43 = vpop.f32.mrf.mxu0  ;;  %2164 = vmatmul.mubr.bf16.vlgmr.msra.gmra.mxu1 %v973_v41 }
 0x1c7   : > { %v937_v44 = vadd.f32 %v2138_v43, %v1891_v33 }
 0x1c8   : > { %v928_v45 = vpop.f32.mrf.mxu0 }
 0x1c9   : > { %v929_v47 = vadd.f32 %v1891_v33, %v928_v45  ;;  %v975_v50 = vpack.c.bf16 %v937_v44, %v934_v48 }
 0x1cb   : > { %v974_v49 = vpack.c.bf16 %v929_v47, %v926_v46 }
 0x1cd   : > { %2167 = vmatprep.mubr.bf16.mxu1 %v974_v49 }
 0x1ce   : > { %2168 = vmatmul.mubr.bf16.gmra.mxu1 %v975_v50 }
 0x1d2   : > { %v2141_v51 = vpop.f32.mrf.mxu0 }
 0x1d3   : > { %v950_v58 = vadd.f32 %v2141_v51, %v1891_v33 }
 0x1d4   : > { %v941_v52 = vpop.f32.mrf.mxu0 }
 0x1d5   : > { %v942_v56 = vadd.f32 %v1891_v33, %v941_v52 }
 0x1d6   : > { %v2142_v53 = vpop.f32.mrf.mxu0 }
 0x1d7   : > { %v953_v54 = vadd.f32 %v2142_v53, %v1891_v33 }
 0x1d8   : > { %v944_v55 = vpop.f32.mrf.mxu0 }
 0x1d9   : > { %v945_v57 = vadd.f32 %v1891_v33, %v944_v55  ;;  %v977_v61 = vpack.c.bf16 %v953_v54, %v950_v58 }
 0x1da   : > { %v2145_v59 = vpop.f32.mrf.mxu0 }
 0x1db   : > { %v976_v60 = vpack.c.bf16 %v945_v57, %v942_v56  ;;  %v966_v4 = vadd.f32 %v2145_v59, %v1891_v33 }
 0x1dc   : > { %v957_v62 = vpop.f32.mrf.mxu0 }
 0x1dd   : > { %2171 = vmatprep.mubr.bf16.mxu1 %v976_v60  ;;  %v958_v2 = vadd.f32 %v1891_v33, %v957_v62 }
 0x1de   : > { %v2146_v63 = vpop.f32.mrf.mxu0  ;;  %2172 = vmatmul.mubr.bf16.gmra.mxu1 %v977_v61 }
 0x1df   : > { %v969_v0 = vadd.f32 %v2146_v63, %v1891_v33 }
 0x1e0   : > { %v960_v1 = vpop.f32.mrf.mxu0 }
 0x1e1   : > { %v961_v3 = vadd.f32 %v1891_v33, %v960_v1  ;;  %v979_v6 = vpack.c.bf16 %v969_v0, %v966_v4 }
 0x1e3   : > { %v978_v5 = vpack.c.bf16 %v961_v3, %v958_v2 }
 0x1e5   : > { %2175 = vmatprep.mubr.bf16.mxu1 %v978_v5 }
 0x1e6   : > { %2176 = vmatmul.mubr.bf16.gmra.mxu1 %v979_v6 }
 0x286   : > { %v2165_v16 = vpop.f32.mrf.mxu1 }
 0x287   : > { %v2815_v17 = vadd.f32 %v2165_v16, %v2812_v15 }
 0x288   : > { %v1085_v18 = vpop.f32.mrf.mxu1 }
 0x289   : > { %v1150_v19 = vsub.f32 0.0, %v2815_v17  ;;  %v2819_v20 = vadd.f32 %v2812_v15, %v1085_v18 }
 0x28a   : > { %v2166_v21 = vpop.f32.mrf.mxu1 }
 0x28b   : > { %v1168_v22 = vmul.f32 1.442695, %v1150_v19  ;;  %v1148_v23 = vsub.f32 0.0, %v2819_v20  ;;  %v2823_v24 = vadd.f32 %v2166_v21, %v2812_v15 }
 0x28c   : > { %v1088_v25 = vpop.f32.mrf.mxu1 }
 0x28d   : > { %v1164_v26 = vmul.f32 1.442695, %v1148_v23  ;;  %v1151_v27 = vsub.f32 0.0, %v2823_v24  ;;  %v2827_v28 = vadd.f32 %v2812_v15, %v1088_v25  ;;  %2354 = vpow2.f32 %v1168_v22 }
 0x28e   : > { %v2169_v29 = vpop.f32.mrf.mxu1 }
 0x28f   : > { %2356 = vpow2.f32 %v1164_v26  ;;  %v1170_v30 = vmul.f32 1.442695, %v1151_v27  ;;  %v1149_v31 = vsub.f32 0.0, %v2827_v28  ;;  %v2831_v32 = vadd.f32 %v2169_v29, %v2812_v15 }
 0x290   : > { %v1101_v33 = vpop.f32.mrf.mxu1 }
 0x291   : > { %2358 = vpow2.f32 %v1170_v30  ;;  %v1166_v34 = vmul.f32 1.442695, %v1149_v31  ;;  %v1154_v35 = vsub.f32 0.0, %v2831_v32  ;;  %v2835_v36 = vadd.f32 %v2812_v15, %v1101_v33 }
 0x292   : > { %v2170_v37 = vpop.f32.mrf.mxu1 }
 0x293   : > { %2360 = vpow2.f32 %v1166_v34  ;;  %v1176_v38 = vmul.f32 1.442695, %v1154_v35  ;;  %v1152_v39 = vsub.f32 0.0, %v2835_v36  ;;  %v2839_v40 = vadd.f32 %v2170_v37, %v2812_v15 }
 0x294   : > { %v1104_v41 = vpop.f32.mrf.mxu1 }
 0x295   : > { %2362 = vpow2.f32 %v1176_v38  ;;  %v1172_v42 = vmul.f32 1.442695, %v1152_v39  ;;  %v1155_v43 = vsub.f32 0.0, %v2839_v40  ;;  %v2843_v44 = vadd.f32 %v2812_v15, %v1104_v41 }
 0x297   : > { %2364 = vpow2.f32 %v1172_v42  ;;  %v1178_v45 = vmul.f32 1.442695, %v1155_v43  ;;  %v1153_v46 = vsub.f32 0.0, %v2843_v44 }
 0x299   : > { %2366 = vpow2.f32 %v1178_v45  ;;  %v1174_v47 = vmul.f32 1.442695, %v1153_v46 }
 0x29a   : > { %v2355_v48 = vpop.eup %2354 }
 0x29b   : > { %2368 = vpow2.f32 %v1174_v47  ;;  %v1198_v52 = vadd.f32 1.0, %v2355_v48 }
 0x29c   : > { %v2357_v49 = vpop.eup %2356 }
 0x29d   : > { %v1196_v50 = vadd.f32 1.0, %v2357_v49 }
 0x29e   : > { %v2359_v51 = vpop.eup %2358  ;;  %v2173_v53 = vpop.f32.mrf.mxu1 }
 0x29f   : > { %v1199_v54 = vadd.f32 1.0, %v2359_v51  ;;  %v2847_v55 = vadd.f32 %v2173_v53, %v2812_v15  ;;  %2370 = vrcp.f32 %v1196_v50 }
 0x2a0   : > { %v2361_v56 = vpop.eup %2360  ;;  %v1117_v57 = vpop.f32.mrf.mxu1 }
 0x2a1   : > { %2372 = vrcp.f32 %v1199_v54  ;;  %v1197_v58 = vadd.f32 1.0, %v2361_v56  ;;  %v1158_v59 = vsub.f32 0.0, %v2847_v55  ;;  %v2851_v60 = vadd.f32 %v2812_v15, %v1117_v57 }
 0x2a2   : > { %v2363_v61 = vpop.eup %2362  ;;  %2374 = vrcp.f32 %v1198_v52  ;;  %v2174_v62 = vpop.f32.mrf.mxu1 }
 0x2a3   : > { %2376 = vrcp.f32 %v1197_v58  ;;  %v1202_v63 = vadd.f32 1.0, %v2363_v61  ;;  %v1184_v0 = vmul.f32 1.442695, %v1158_v59  ;;  %v1156_v1 = vsub.f32 0.0, %v2851_v60 }
 0x2a4   : > { %v2365_v2 = vpop.eup %2364  ;;  %v2855_v3 = vadd.f32 %v2174_v62, %v2812_v15  ;;  %v1120_v4 = vpop.f32.mrf.mxu1 }
 0x2a5   : > { %2378 = vrcp.f32 %v1202_v63  ;;  %v1200_v5 = vadd.f32 1.0, %v2365_v2  ;;  %v1180_v6 = vmul.f32 1.442695, %v1156_v1  ;;  %v2858_v7 = vadd.f32 %v2812_v15, %v1120_v4 }
 0x2a6   : > { %v2367_v8 = vpop.eup %2366  ;;  %2380 = vpow2.f32 %v1184_v0  ;;  %v1159_v9 = vsub.f32 0.0, %v2855_v3  ;;  %v2177_v10 = vpop.f32.mrf.mxu1 }
 0x2a7   : > { %2382 = vrcp.f32 %v1200_v5  ;;  %v1203_v11 = vadd.f32 1.0, %v2367_v8  ;;  %v1157_v12 = vsub.f32 0.0, %v2858_v7  ;;  %v2863_v13 = vadd.f32 %v2177_v10, %v2812_v15 }
 0x2a8   : > { %v2369_v14 = vpop.eup %2368  ;;  %2384 = vpow2.f32 %v1180_v6  ;;  %v1186_v16 = vmul.f32 1.442695, %v1159_v9  ;;  %v1133_v18 = vpop.f32.mrf.mxu1 }
 0x2a9   : > { %2386 = vrcp.f32 %v1203_v11  ;;  %v1201_v19 = vadd.f32 1.0, %v2369_v14  ;;  %v1182_v21 = vmul.f32 1.442695, %v1157_v12  ;;  %v1162_v22 = vsub.f32 0.0, %v2863_v13 }
 0x2aa   : > { %2388 = vpow2.f32 %v1186_v16  ;;  %v2867_v23 = vadd.f32 %v2812_v15, %v1133_v18  ;;  %v2178_v25 = vpop.f32.mrf.mxu1 }
 0x2ab   : > { %2390 = vrcp.f32 %v1201_v19  ;;  %v1192_v26 = vmul.f32 1.442695, %v1162_v22  ;;  %v2870_v27 = vadd.f32 %v2178_v25, %v2812_v15 }
 0x2ac   : > { %2392 = vpow2.f32 %v1182_v21  ;;  %v1160_v29 = vsub.f32 0.0, %v2867_v23  ;;  %v1136_v30 = vpop.f32.mrf.mxu1  ;;  %v2371_v31 = vpop.eup %2370 }
 0x2ad   : > { %v1163_v33 = vsub.f32 0.0, %v2870_v27  ;;  %v2875_v34 = vadd.f32 %v2812_v15, %v1136_v30  ;;  %2394 = vpow2.f32 %v1192_v26  ;;  %v1228_v45 = vmul.f32 %v2371_v31, %v2819_v20 }
 0x2ae   : > { %v2373_v35 = vpop.eup %2372  ;;  %v1188_v37 = vmul.f32 1.442695, %v1160_v29 }
 0x2af   : > { %v2375_v38 = vpop.eup %2374  ;;  %v1194_v39 = vmul.f32 1.442695, %v1163_v33  ;;  %v1161_v41 = vsub.f32 0.0, %v2875_v34  ;;  %v1231_v43 = vmul.f32 %v2373_v35, %v2823_v24  ;;  %v2351_v35 = vld [vmem:[%s3081_s6 + $0x10] sm:$0xff]  }
 0x2b0   : > { %v2377_v42 = vpop.eup %2376  ;;  %2396 = vpow2.f32 %v1188_v37  ;;  %v1230_v15 = vmul.f32 %v2375_v38, %v2815_v17  ;;  %v2352_v37 = vld [vmem:[%s3081_s6 + $0x8] sm:$0xff]   ;;  %v2353_v38 = vld [vmem:[%s3081_s6] sm:$0xff]  }
 0x2b1   : > { %v1229_v46 = vmul.f32 %v2377_v42, %v2827_v28  ;;  %2398 = vpow2.f32 %v1194_v39  ;;  %v1190_v47 = vmul.f32 1.442695, %v1161_v41  ;;  %v2921_v39 = vld [vmem:[%s3080_s5 + $0x1] ss:$0 sm:$0xff] }
 0x2b2   : > { %v2379_v48 = vpop.eup %2378  ;;  %v1245_v52 = vpack.c.bf16 %v1231_v43, %v1230_v15 }
 0x2b3   : > { %v2381_v49 = vpop.eup %2380  ;;  %2400 = vpow2.f32 %v1190_v47  ;;  %v1244_v50 = vpack.c.bf16 %v1229_v46, %v1228_v45  ;;  %v1234_v62 = vmul.f32 %v2379_v48, %v2831_v32 }
 0x2b4   : > { %v2383_v51 = vpop.eup %2382  ;;  %v1206_v57 = vadd.f32 1.0, %v2381_v49 }
 0x2b5   : > { %v2385_v53 = vpop.eup %2384  ;;  %2195 = vmatprep.mubr.bf16.mxu0 %v1244_v50  ;;  %v1232_v61 = vmul.f32 %v2383_v51, %v2835_v36 }
 0x2b6   : > { %v2387_v54 = vpop.eup %2386  ;;  %v1204_v56 = vadd.f32 1.0, %v2385_v53  ;;  %2196 = vmatmul.mubr.bf16.vlgmr.msra.gmra.mxu0 %v1245_v52 }
 0x2b7   : > { %v2389_v24 = vpop.eup %2388  ;;  %v1235_v28 = vmul.f32 %v2387_v54, %v2839_v40 }
 0x2b8   : > { %v2391_v20 = vpop.eup %2390  ;;  %v1207_v58 = vadd.f32 1.0, %v2389_v24  ;;  %2402 = vrcp.f32 %v1204_v56 }
 0x2b9   : > { %v2393_v59 = vpop.eup %2392  ;;  %v1233_v17 = vmul.f32 %v2391_v20, %v2843_v44  ;;  %v1247_v2 = vpack.c.bf16 %v1235_v28, %v1234_v62 }
 0x2ba   : > { %2404 = vrcp.f32 %v1207_v58  ;;  %v1205_v63 = vadd.f32 1.0, %v2393_v59  ;;  %v2395_v0 = vpop.eup %2394 }
 0x2bb   : > { %2406 = vrcp.f32 %v1206_v57  ;;  %v1246_v1 = vpack.c.bf16 %v1233_v17, %v1232_v61  ;;  %v1210_v40 = vadd.f32 1.0, %v2395_v0 }
 0x2bc   : > { %2408 = vrcp.f32 %v1205_v63 }
 0x2bd   : > { %v2397_v4 = vpop.eup %2396  ;;  %2199 = vmatprep.mubr.bf16.mxu0 %v1246_v1 }
 0x2be   : > { %v2399_v5 = vpop.eup %2398  ;;  %v1208_v6 = vadd.f32 1.0, %v2397_v4  ;;  %2200 = vmatmul.mubr.bf16.gmra.mxu0 %v1247_v2 }
 0x2bf   : > { %v1211_v8 = vadd.f32 1.0, %v2399_v5 }
 0x2c0   : > { %v2401_v36 = vpop.eup %2400  ;;  %2410 = vrcp.f32 %v1208_v6 }
 0x2c1   : > { %2412 = vrcp.f32 %v1211_v8  ;;  %v1209_v44 = vadd.f32 1.0, %v2401_v36 }
 0x2c2   : > { %2414 = vrcp.f32 %v1210_v40 }
 0x2c3   : > { %2416 = vrcp.f32 %v1209_v44 }
 0x2c5   : > { %v2403_v32 = vpop.eup %2402 }
 0x2c6   : > { %v1236_v14 = vmul.f32 %v2403_v32, %v2851_v60 }
 0x2c7   : > { %v2405_v9 = vpop.eup %2404 }
 0x2c8   : > { %v2407_v10 = vpop.eup %2406  ;;  %v1239_v12 = vmul.f32 %v2405_v9, %v2855_v3 }
 0x2c9   : > { %v2409_v11 = vpop.eup %2408  ;;  %v1238_v18 = vmul.f32 %v2407_v10, %v2847_v55  ;;  %v2346_v55 = vld [vmem:[%s3081_s6 + $0x38] sm:$0xff]  }
 0x2ca   : > { %v1237_v16 = vmul.f32 %v2409_v11, %v2858_v7  ;;  %2211 = vmatprep.subr.bf16.mxu0 %v2346_v55  ;;  %2243 = vmatprep.subr.bf16.mxu1 %v2346_v55 }
 0x2cb   : > { %v1249_v22 = vpack.c.bf16 %v1239_v12, %v1238_v18  ;;  %2212 = vmatpush3.bf16.msra.mxu0 %v2346_v55  ;;  %2251 = vmatpush3.bf16.msra.mxu1 %v2346_v55 }
 0x2cc   : > { %v1248_v19 = vpack.c.bf16 %v1237_v16, %v1236_v14 }
 0x2cd   : > { %v2411_v21 = vpop.eup %2410 }
 0x2ce   : > { %v2413_v25 = vpop.eup %2412  ;;  %2203 = vmatprep.mubr.bf16.mxu0 %v1248_v19  ;;  %v1240_v30 = vmul.f32 %v2411_v21, %v2867_v23  ;;  %v2347_v23 = vld [vmem:[%s3081_s6 + $0x30] sm:$0xff]  }
 0x2cf   : > { %v2415_v26 = vpop.eup %2414  ;;  %2204 = vmatmul.mubr.bf16.gmra.mxu0 %v1249_v22  ;;  %v1243_v31 = vmul.f32 %v2413_v25, %v2870_v27  ;;  %2213 = vmatprep.subr.bf16.mxu0 %v2347_v23  ;;  %v2349_v27 = vld [vmem:[%s3081_s6 + $0x20] sm:$0xff]  }
 0x2d0   : > { %v2417_v29 = vpop.eup %2416  ;;  %v1242_v60 = vmul.f32 %v2415_v26, %v2863_v13  ;;  %2244 = vmatprep.subr.bf16.mxu1 %v2347_v23  ;;  %2214 = vmatpush3.bf16.msra.mxu0 %v2347_v23  ;;  %v2348_v13 = vld [vmem:[%s3081_s6 + $0x28] sm:$0xff]  }
 0x2d1   : > { %v1241_v3 = vmul.f32 %v2417_v29, %v2875_v34  ;;  %2252 = vmatpush3.bf16.msra.mxu1 %v2347_v23  ;;  %2215 = vmatprep.subr.bf16.mxu0 %v2348_v13  ;;  %v2350_v34 = vld [vmem:[%s3081_s6 + $0x18] sm:$0xff]  }
 0x2d2   : > { %v1251_v7 = vpack.c.bf16 %v1243_v31, %v1242_v60  ;;  %2245 = vmatprep.subr.bf16.mxu1 %v2348_v13 }
 0x2d3   : > { %v1250_v33 = vpack.c.bf16 %v1241_v3, %v1240_v30 }
 0x2d4   : > { %2216 = vmatpush3.bf16.msra.mxu0 %v2348_v13 }
 0x2d5   : > { %2207 = vmatprep.mubr.bf16.mxu0 %v1250_v33  ;;  %2253 = vmatpush3.bf16.msra.mxu1 %v2348_v13 }
 0x2d6   : > { %2217 = vmatprep.subr.bf16.mxu0 %v2349_v27  ;;  %2246 = vmatprep.subr.bf16.mxu1 %v2349_v27 }
 0x2d7   : > { %2208 = vmatmul.mubr.bf16.gmra.mxu0 %v1251_v7 }
 0x2d8   : > { %2218 = vmatpush3.bf16.msra.mxu0 %v2349_v27 }
 0x2d9   : > { %2254 = vmatpush3.bf16.msra.mxu1 %v2349_v27  ;;  %2219 = vmatprep.subr.bf16.mxu0 %v2350_v34 }
 0x2da   : > { %2247 = vmatprep.subr.bf16.mxu1 %v2350_v34 }
 0x2dc   : > { %2220 = vmatpush3.bf16.msra.mxu0 %v2350_v34 }
 0x2dd   : > { %2255 = vmatpush3.bf16.msra.mxu1 %v2350_v34  ;;  %2221 = vmatprep.subr.bf16.mxu0 %v2351_v35 }
 0x2de   : > { %2248 = vmatprep.subr.bf16.mxu1 %v2351_v35 }
 0x2e0   : > { %2222 = vmatpush3.bf16.msra.mxu0 %v2351_v35 }
 0x2e1   : > { %2256 = vmatpush3.bf16.msra.mxu1 %v2351_v35  ;;  %2223 = vmatprep.subr.bf16.mxu0 %v2352_v37 }
 0x2e2   : > { %2249 = vmatprep.subr.bf16.mxu1 %v2352_v37 }
 0x2e4   : > { %2224 = vmatpush3.bf16.msra.mxu0 %v2352_v37 }
 0x2e5   : > { %2257 = vmatpush3.bf16.msra.mxu1 %v2352_v37  ;;  %2225 = vmatprep.subr.bf16.mxu0 %v2353_v38 }
 0x2e6   : > { %2250 = vmatprep.subr.bf16.mxu1 %v2353_v38 }
 0x2e8   : > { %2226 = vmatpush3.bf16.msra.mxu0 %v2353_v38 }
 0x2e9   : > { %2258 = vmatpush3.bf16.msra.mxu1 %v2353_v38 }
 0x376   : > { %v2197_v41 = vpop.f32.mrf.mxu0 }
 0x377   : > { %v2924_v42 = vadd.f32 %v2197_v41, %v2921_v39 }
 0x378   : > { %v1359_v43 = vpop.f32.mrf.mxu0 }
 0x379   : > { %v1424_v45 = vsub.f32 0.0, %v2924_v42  ;;  %v2928_v46 = vadd.f32 %v2921_v39, %v1359_v43 }
 0x37a   : > { %v2198_v47 = vpop.f32.mrf.mxu0 }
 0x37b   : > { %v1442_v48 = vmul.f32 1.442695, %v1424_v45  ;;  %v1422_v15 = vsub.f32 0.0, %v2928_v46  ;;  %v2932_v49 = vadd.f32 %v2198_v47, %v2921_v39 }
 0x37c   : > { %v1362_v50 = vpop.f32.mrf.mxu0 }
 0x37d   : > { %v1438_v51 = vmul.f32 1.442695, %v1422_v15  ;;  %v1425_v52 = vsub.f32 0.0, %v2932_v49  ;;  %v2936_v53 = vadd.f32 %v2921_v39, %v1362_v50  ;;  %2418 = vpow2.f32 %v1442_v48 }
 0x37e   : > { %v2201_v54 = vpop.f32.mrf.mxu0 }
 0x37f   : > { %2420 = vpow2.f32 %v1438_v51  ;;  %v1444_v56 = vmul.f32 1.442695, %v1425_v52  ;;  %v1423_v24 = vsub.f32 0.0, %v2936_v53  ;;  %v2940_v57 = vadd.f32 %v2201_v54, %v2921_v39 }
 0x380   : > { %v1375_v20 = vpop.f32.mrf.mxu0 }
 0x381   : > { %2422 = vpow2.f32 %v1444_v56  ;;  %v1440_v28 = vmul.f32 1.442695, %v1423_v24  ;;  %v1428_v58 = vsub.f32 0.0, %v2940_v57  ;;  %v2944_v59 = vadd.f32 %v2921_v39, %v1375_v20 }
 0x382   : > { %v2202_v61 = vpop.f32.mrf.mxu0 }
 0x383   : > { %2424 = vpow2.f32 %v1440_v28  ;;  %v1450_v17 = vmul.f32 1.442695, %v1428_v58  ;;  %v1426_v62 = vsub.f32 0.0, %v2944_v59  ;;  %v2948_v63 = vadd.f32 %v2202_v61, %v2921_v39 }
 0x384   : > { %v1378_v0 = vpop.f32.mrf.mxu0 }
 0x385   : > { %2426 = vpow2.f32 %v1450_v17  ;;  %v1446_v1 = vmul.f32 1.442695, %v1426_v62  ;;  %v1429_v2 = vsub.f32 0.0, %v2948_v63  ;;  %v2952_v4 = vadd.f32 %v2921_v39, %v1378_v0 }
 0x387   : > { %2428 = vpow2.f32 %v1446_v1  ;;  %v1452_v5 = vmul.f32 1.442695, %v1429_v2  ;;  %v1427_v40 = vsub.f32 0.0, %v2952_v4 }
 0x389   : > { %2430 = vpow2.f32 %v1452_v5  ;;  %v1448_v6 = vmul.f32 1.442695, %v1427_v40 }
 0x38a   : > { %v2419_v8 = vpop.eup %2418 }
 0x38b   : > { %2432 = vpow2.f32 %v1448_v6  ;;  %v1472_v9 = vadd.f32 1.0, %v2419_v8 }
 0x38c   : > { %v2421_v36 = vpop.eup %2420 }
 0x38d   : > { %v1470_v44 = vadd.f32 1.0, %v2421_v36 }
 0x38e   : > { %v2423_v32 = vpop.eup %2422 }
 0x38f   : > { %v1473_v10 = vadd.f32 1.0, %v2423_v32  ;;  %v2205_v11 = vpop.f32.mrf.mxu0  ;;  %2434 = vrcp.f32 %v1470_v44 }
 0x390   : > { %v2425_v12 = vpop.eup %2424  ;;  %v2956_v14 = vadd.f32 %v2205_v11, %v2921_v39 }
 0x391   : > { %2436 = vrcp.f32 %v1473_v10  ;;  %v1471_v16 = vadd.f32 1.0, %v2425_v12  ;;  %v1391_v18 = vpop.f32.mrf.mxu0 }
 0x392   : > { %v2427_v19 = vpop.eup %2426  ;;  %2438 = vrcp.f32 %v1472_v9  ;;  %v1432_v21 = vsub.f32 0.0, %v2956_v14  ;;  %v2960_v22 = vadd.f32 %v2921_v39, %v1391_v18 }
 0x393   : > { %2440 = vrcp.f32 %v1471_v16  ;;  %v1476_v25 = vadd.f32 1.0, %v2427_v19  ;;  %v2206_v26 = vpop.f32.mrf.mxu0 }
 0x394   : > { %v2429_v29 = vpop.eup %2428  ;;  %v1458_v30 = vmul.f32 1.442695, %v1432_v21  ;;  %v1430_v31 = vsub.f32 0.0, %v2960_v22  ;;  %v2964_v3 = vadd.f32 %v2206_v26, %v2921_v39 }
 0x395   : > { %2442 = vrcp.f32 %v1476_v25  ;;  %v1474_v60 = vadd.f32 1.0, %v2429_v29  ;;  %v1394_v33 = vpop.f32.mrf.mxu0 }
 0x396   : > { %v2431_v7 = vpop.eup %2430  ;;  %2444 = vpow2.f32 %v1458_v30  ;;  %v1454_v55 = vmul.f32 1.442695, %v1430_v31  ;;  %v1433_v23 = vsub.f32 0.0, %v2964_v3  ;;  %v2968_v13 = vadd.f32 %v2921_v39, %v1394_v33 }
 0x397   : > { %2446 = vrcp.f32 %v1474_v60  ;;  %v1477_v27 = vadd.f32 1.0, %v2431_v7  ;;  %v2209_v34 = vpop.f32.mrf.mxu0 }
 0x398   : > { %v2433_v35 = vpop.eup %2432  ;;  %2448 = vpow2.f32 %v1454_v55  ;;  %v1460_v37 = vmul.f32 1.442695, %v1433_v23  ;;  %v1431_v38 = vsub.f32 0.0, %v2968_v13  ;;  %v2972_v41 = vadd.f32 %v2209_v34, %v2921_v39 }
 0x399   : > { %2450 = vrcp.f32 %v1477_v27  ;;  %v1475_v43 = vadd.f32 1.0, %v2433_v35  ;;  %v1407_v45 = vpop.f32.mrf.mxu0 }
 0x39a   : > { %2452 = vpow2.f32 %v1460_v37  ;;  %v1456_v47 = vmul.f32 1.442695, %v1431_v38  ;;  %v1436_v48 = vsub.f32 0.0, %v2972_v41  ;;  %v2976_v15 = vadd.f32 %v2921_v39, %v1407_v45 }
 0x39b   : > { %2454 = vrcp.f32 %v1475_v43  ;;  %v2210_v50 = vpop.f32.mrf.mxu0 }
 0x39c   : > { %2456 = vpow2.f32 %v1456_v47  ;;  %v1466_v51 = vmul.f32 1.442695, %v1436_v48  ;;  %v1434_v52 = vsub.f32 0.0, %v2976_v15  ;;  %v2980_v54 = vadd.f32 %v2210_v50, %v2921_v39  ;;  %v2435_v56 = vpop.eup %2434 }
 0x39d   : > { %v1410_v24 = vpop.f32.mrf.mxu0  ;;  %v1502_v5 = vmul.f32 %v2435_v56, %v2928_v46 }
 0x39e   : > { %v2437_v20 = vpop.eup %2436  ;;  %v1462_v28 = vmul.f32 1.442695, %v1434_v52  ;;  %v1437_v58 = vsub.f32 0.0, %v2980_v54  ;;  %v2984_v61 = vadd.f32 %v2921_v39, %v1410_v24  ;;  %2458 = vpow2.f32 %v1466_v51 }
 0x39f   : > { %v2439_v17 = vpop.eup %2438  ;;  %v1505_v0 = vmul.f32 %v2437_v20, %v2932_v49 }
 0x3a0   : > { %v2441_v62 = vpop.eup %2440  ;;  %2460 = vpow2.f32 %v1462_v28  ;;  %v1468_v1 = vmul.f32 1.442695, %v1437_v58  ;;  %v1435_v2 = vsub.f32 0.0, %v2984_v61  ;;  %v1504_v8 = vmul.f32 %v2439_v17, %v2924_v42 }
 0x3a1   : > { %v1503_v40 = vmul.f32 %v2441_v62, %v2936_v53 }
 0x3a2   : > { %v2443_v6 = vpop.eup %2442  ;;  %2462 = vpow2.f32 %v1468_v1  ;;  %v1464_v36 = vmul.f32 1.442695, %v1435_v2  ;;  %v1519_v9 = vpack.c.bf16 %v1505_v0, %v1504_v8 }
 0x3a3   : > { %v2445_v39 = vpop.eup %2444  ;;  %v1518_v44 = vpack.c.bf16 %v1503_v40, %v1502_v5  ;;  %v1508_v25 = vmul.f32 %v2443_v6, %v2940_v57 }
 0x3a4   : > { %v2447_v32 = vpop.eup %2446  ;;  %2464 = vpow2.f32 %v1464_v36  ;;  %v1480_v16 = vadd.f32 1.0, %v2445_v39 }
 0x3a5   : > { %v2449_v10 = vpop.eup %2448  ;;  %2227 = vmatprep.mubr.bf16.mxu0 %v1518_v44  ;;  %v1506_v42 = vmul.f32 %v2447_v32, %v2944_v59 }
 0x3a6   : > { %v2451_v49 = vpop.eup %2450  ;;  %v1478_v11 = vadd.f32 1.0, %v2449_v10  ;;  %2228 = vmatmul.mubr.bf16.vlgmr.msra.gmra.mxu0 %v1519_v9 }
 0x3a7   : > { %v2453_v12 = vpop.eup %2452  ;;  %v1509_v53 = vmul.f32 %v2451_v49, %v2948_v63 }
 0x3a8   : > { %v2455_v46 = vpop.eup %2454  ;;  %v1481_v18 = vadd.f32 1.0, %v2453_v12  ;;  %2466 = vrcp.f32 %v1478_v11 }
 0x3a9   : > { %v2457_v19 = vpop.eup %2456  ;;  %v1507_v21 = vmul.f32 %v2455_v46, %v2952_v4  ;;  %v1521_v31 = vpack.c.bf16 %v1509_v53, %v1508_v25 }
 0x3aa   : > { %2468 = vrcp.f32 %v1481_v18  ;;  %v1479_v26 = vadd.f32 1.0, %v2457_v19 }
 0x3ab   : > { %2470 = vrcp.f32 %v1480_v16  ;;  %v1520_v29 = vpack.c.bf16 %v1507_v21, %v1506_v42  ;;  %v2459_v30 = vpop.eup %2458 }
 0x3ac   : > { %2472 = vrcp.f32 %v1479_v26  ;;  %v1484_v7 = vadd.f32 1.0, %v2459_v30 }
 0x3ad   : > { %v2461_v60 = vpop.eup %2460  ;;  %2231 = vmatprep.mubr.bf16.mxu1 %v1520_v29 }
 0x3ae   : > { %v1482_v33 = vadd.f32 1.0, %v2461_v60  ;;  %2232 = vmatmul.mubr.bf16.vlgmr.msra.gmra.mxu1 %v1521_v31 }
 0x3af   : > { %v2463_v63 = vpop.eup %2462 }
 0x3b0   : > { %v1485_v55 = vadd.f32 1.0, %v2463_v63  ;;  %2474 = vrcp.f32 %v1482_v33 }
 0x3b1   : > { %v2465_v59 = vpop.eup %2464 }
 0x3b2   : > { %2476 = vrcp.f32 %v1485_v55  ;;  %v1483_v4 = vadd.f32 1.0, %v2465_v59 }
 0x3b3   : > { %2478 = vrcp.f32 %v1484_v7 }
 0x3b4   : > { %2480 = vrcp.f32 %v1483_v4 }
 0x3b5   : > { %v2467_v57 = vpop.eup %2466 }
 0x3b6   : > { %v1510_v37 = vmul.f32 %v2467_v57, %v2960_v22 }
 0x3b7   : > { %v2469_v23 = vpop.eup %2468 }
 0x3b8   : > { %v2471_v27 = vpop.eup %2470  ;;  %v1513_v35 = vmul.f32 %v2469_v23, %v2964_v3 }
 0x3b9   : > { %v2473_v34 = vpop.eup %2472  ;;  %v1512_v43 = vmul.f32 %v2471_v27, %v2956_v14 }
 0x3ba   : > { %v1511_v38 = vmul.f32 %v2473_v34, %v2968_v13 }
 0x3bb   : > { %v1523_v47 = vpack.c.bf16 %v1513_v35, %v1512_v43 }
 0x3bc   : > { %v1522_v45 = vpack.c.bf16 %v1511_v38, %v1510_v37 }
 0x3bd   : > { %v2475_v48 = vpop.eup %2474 }
 0x3be   : > { %2235 = vmatprep.mubr.bf16.mxu1 %v1522_v45  ;;  %v1514_v3 = vmul.f32 %v2475_v48, %v2976_v15 }
 0x3bf   : > { %v2477_v50 = vpop.eup %2476  ;;  %2236 = vmatmul.mubr.bf16.gmra.mxu1 %v1523_v47 }
 0x3c0   : > { %v2479_v51 = vpop.eup %2478  ;;  %v1517_v56 = vmul.f32 %v2477_v50, %v2980_v54 }
 0x3c1   : > { %v2481_v52 = vpop.eup %2480  ;;  %v1516_v13 = vmul.f32 %v2479_v51, %v2972_v41 }
 0x3c2   : > { %v1515_v22 = vmul.f32 %v2481_v52, %v2984_v61 }
 0x3c3   : > { %v1525_v14 = vpack.c.bf16 %v1517_v56, %v1516_v13 }
 0x3c4   : > { %v1524_v24 = vpack.c.bf16 %v1515_v22, %v1514_v3 }
 0x3c6   : > { %2239 = vmatprep.mubr.bf16.mxu1 %v1524_v24 }
 0x3c7   : > { %2240 = vmatmul.mubr.bf16.gmra.mxu1 %v1525_v14 }
 0x466   : > { %v2229_v20 = vpop.f32.mrf.mxu0 }
 0x467   : > { %1689 = vst [vmem:[%s3006_s15 + $0x10] sm:$0xff] %v2229_v20 }
 0x468   : > { %v1624_v41 = vpop.f32.mrf.mxu0 }
 0x469   : > { %1687 = vst [vmem:[%s3006_s15] sm:$0xff] %v1624_v41 }
 0x46a   : > { %v2230_v15 = vpop.f32.mrf.mxu0 }
 0x46b   : > { %1690 = vst [vmem:[%s3006_s15 + $0x18] sm:$0xff] %v2230_v15 }
 0x46c   : > { %v1627_v54 = vpop.f32.mrf.mxu0 }
 0x46d   : > { %1688 = vst [vmem:[%s3006_s15 + $0x8] sm:$0xff] %v1627_v54 }
 0x46e   : > { %v2233_v28 = vpop.f32.mrf.mxu1 }
 0x46f   : > { %1949 = vst [vmem:[%s3006_s15 + $0x30] sm:$0xff] %v2233_v28 }
 0x470   : > { %v1640_v58 = vpop.f32.mrf.mxu1 }
 0x471   : > { %1947 = vst [vmem:[%s3006_s15 + $0x20] sm:$0xff] %v1640_v58 }
 0x472   : > { %v2234_v61 = vpop.f32.mrf.mxu1 }
 0x473   : > { %1950 = vst [vmem:[%s3006_s15 + $0x38] sm:$0xff] %v2234_v61 }
 0x474   : > { %v1643_v17 = vpop.f32.mrf.mxu1 }
 0x475   : > { %1948 = vst [vmem:[%s3006_s15 + $0x28] sm:$0xff] %v1643_v17 }
 0x47f   : > { %v2237_v62 = vpop.f32.mrf.mxu1 }
 0x480   : > { %1953 = vst [vmem:[%s3006_s15 + $0x50] sm:$0xff] %v2237_v62 }
 0x481   : > { %v1656_v0 = vpop.f32.mrf.mxu1 }
 0x482   : > { %1951 = vst [vmem:[%s3006_s15 + $0x40] sm:$0xff] %v1656_v0 }
 0x483   : > { %v2238_v1 = vpop.f32.mrf.mxu1 }
 0x484   : > { %1954 = vst [vmem:[%s3006_s15 + $0x58] sm:$0xff] %v2238_v1 }
 0x485   : > { %v1659_v2 = vpop.f32.mrf.mxu1 }
 0x486   : > { %1952 = vst [vmem:[%s3006_s15 + $0x48] sm:$0xff] %v1659_v2 }
 0x487   : > { %v2241_v5 = vpop.f32.mrf.mxu1 }
 0x488   : > { %1957 = vst [vmem:[%s3006_s15 + $0x70] sm:$0xff] %v2241_v5 }
 0x489   : > { %v1672_v40 = vpop.f32.mrf.mxu1 }
 0x48a   : > { %1955 = vst [vmem:[%s3006_s15 + $0x60] sm:$0xff] %v1672_v40 }
 0x48b   : > { %v2242_v6 = vpop.f32.mrf.mxu1 }
 0x48c   : > { %1958 = vst [vmem:[%s3006_s15 + $0x78] sm:$0xff] %v2242_v6 }
 0x48d   : > { %v1675_v8 = vpop.f32.mrf.mxu1 }
 0x48e   : > { %1956 = vst [vmem:[%s3006_s15 + $0x68] sm:$0xff] %v1675_v8 }
 0x48f   : > { %2495 = shalt.err (!%p2492_p3)
}
 0x490   : > { %s2496_s8 = scalar_lea.hbm %s3027_s20, 2048  ;;  %s2500_s14 = scalar_lea.hbm %s3082_s7, 4096 }
 0x491   : > { %p2497_p4 = scmp.ne.s32.totalorder %s3027_s20, %s2496_s8  ;;  %p2501_p9 = scmp.lt.s32.totalorder %s3027_s20, %s3082_s7 }
 0x492   : > { %p2502_p10 = scmp.lt.s32.totalorder %s2500_s14, %s2496_s8 }
 0x493   : > { %p2498_p7 = pnand %p2497_p4, %p2626_p5 }
 0x494   : > { %p2503_p11 = por %p2502_p10, %p2501_p9 }
 0x495   : > { %p2499_p8 = pneg %p2498_p7 }
 0x497   : > { %p2504_p12 = pnand %p2503_p11, %p2499_p8 }
 0x499   : > { %2507 = shalt.err (!%p2504_p12)
}
 0x49a   : > { %s2546_s18 = smov 128   ;;  %s2547_s19 = smov 8  }
 0x49b   : > { %2260 = dma.vmem_to_hbm [thread:$0]  (%p2626_p5), %s3029_s17, 2048, %s3027_s20, %s3035_s21, %s2546_s18, %s2546_s18, %s2547_s19  }
 0x49c PF: > { %p2266_p13 = scmp.ge.s32.totalorder %s2542_s27, 2  ;;  %s1736_s28 = sand.u32 1, %s2530_s24  }
 0x49d   : > { %s1737_s22 = scalar_lea.sflag [#allocation3], %s1736_s28 }
 0x49e   : > { %p2263_p0 = pnand %p2266_p13, %p2630_p6 }
 0x4a0   : > { %p2264_p1 = pneg %p2263_p0 }
 0x4a2   : > { %2525 = dma.done.wait (%p2264_p1), %s1737_s22, 2048  }
 0x4a3   : > { %2527 = vsyncadd (%p2264_p1), %s1737_s22, 4294965248  ;;  %p17_p2 = scmp.ge.s32.totalorder %s2613_s30, 4   ;;  %s3085_s24 = smov %s2534_s25 }
 0x4a4   : > { %s3086_s25 = smov %s2538_s26  ;;  %s3087_s26 = smov %s2624_s10 }
 0x4a5   : > { %s3088_s27 = smov %s2613_s30  ;;  %19 = sbr.rel (!%p17_p2) target bundleno = 3 (0x3), region = 97 }
 0x4aa   :  { %1742 = vsyncpa [#allocation3], 1 }
 0x4ab   :  { %1744 = vsyncpa [#allocation3 + $0x1], 1 }

</bundles_post_ra>
